<compile_context>
chip_gen: v7x
topology: tpu7x:2x2x1
jax: 0.10.0
libtpu: 0.0.40
codegen_flags: <defaults>
</compile_context>

<pallas_src>
import functools

import jax
import jax.numpy as jnp
import numpy as np
from jax.experimental import pallas as pl
from jax.experimental.pallas import tpu as pltpu


def _idcnn_block_kernel(x_ref, w_ref, bias_ref, ln_a_ref, ln_b_ref, o_ref, *,
                        dilations, kernel_size, eps, act, compute_dtype):
    # x_ref: (Bt, L, C) activation block; w_ref: (K*C, C) shared conv weight
    # (tap-major rows); bias_ref: (NL, 1, C); ln_a_ref/ln_b_ref: (NL, L, C).
    x = x_ref[...].astype(jnp.float32)               # (Bt, L, C), carried in f32
    Bt, L, C = x.shape
    K = kernel_size
    w = w_ref[...]                                   # already in compute_dtype

    for layer, d in enumerate(dilations):
        pad = K // 2 + d - 1
        # Pad once along L, then take K static shifted slices.
        if pad > 0:
            zeros = jnp.zeros((Bt, pad, C), jnp.float32)
            x_pad = jnp.concatenate([zeros, x, zeros], axis=1)   # (Bt, L+2p, C)
        else:
            x_pad = x
        # Concatenate the K taps along the channel (lane) axis -> one MXU dot.
        xs = jnp.concatenate(
            [x_pad[:, k * d:k * d + L, :] for k in range(K)], axis=-1)
        xs2 = xs.reshape(Bt * L, K * C).astype(compute_dtype)
        h = jnp.dot(xs2, w, preferred_element_type=jnp.float32)  # (Bt*L, C) f32
        h = h.reshape(Bt, L, C) + bias_ref[layer]                # + (1, C)

        if act == "relu":
            h = jnp.maximum(h, 0.0)
        else:  # 'gelu' -- exact erf form to match torch nn.GELU default
            h = jax.nn.gelu(h, approximate=False)

        # LayerNorm(max_length): normalize over L per (batch, channel);
        # torch unbiased std (divisor L-1), eps added to std (not var).
        mean = jnp.mean(h, axis=1, keepdims=True)                        # (Bt,1,C)
        var = jnp.sum((h - mean) ** 2, axis=1, keepdims=True) / (L - 1)  # (Bt,1,C)
        rstd = pl.reciprocal(jnp.sqrt(var) + eps, approx=False)          # tiny row
        y = ln_a_ref[layer] * ((h - mean) * rstd) + ln_b_ref[layer]      # (L,C) bc

        x = y + x                                     # residual with pre-conv input

    o_ref[...] = x.astype(o_ref.dtype)


def idcnn_block(x, w_kio, biases, ln_a, ln_b, dilations, *, kernel_size=3,
                eps=1e-6, act="relu", compute_dtype=jnp.float32, batch_block=1):
    """x: (B, L, C); w_kio: (K, Cin, Cout) shared conv weight;
    biases: (NL, C); ln_a/ln_b: (NL, L); dilations: length-NL tuple."""
    # TODO(synk): `mask` zeroing (inputs[mask==0]=0) not implemented; forward is
    # exercised with mask=None. `residual_mode` is unused in the reference forward.
    B, L, C = x.shape
    K = kernel_size
    NL = len(dilations)
    Bt = batch_block
    assert B % Bt == 0

    # Reshape weight once to (K*C, C) (tap-major rows) and cast to compute dtype.
    w_cat = w_kio.reshape(K * C, C).astype(compute_dtype)
    bias_st = biases.reshape(NL, 1, C).astype(jnp.float32)
    # Pre-broadcast LN params to lane-dense (NL, L, C) blocks (loaded once).
    ln_a_bc = jnp.broadcast_to(ln_a[:, :, None], (NL, L, C)).astype(jnp.float32)
    ln_b_bc = jnp.broadcast_to(ln_b[:, :, None], (NL, L, C)).astype(jnp.float32)

    kernel = functools.partial(
        _idcnn_block_kernel, dilations=tuple(int(d) for d in dilations),
        kernel_size=K, eps=eps, act=act, compute_dtype=compute_dtype)

    return pl.pallas_call(
        kernel,
        out_shape=jax.ShapeDtypeStruct((B, L, C), x.dtype),
        grid_spec=pltpu.PrefetchScalarGridSpec(
            num_scalar_prefetch=0,
            grid=(B // Bt,),
            in_specs=[
                pl.BlockSpec((Bt, L, C), lambda b: (b, 0, 0)),    # activation
                pl.BlockSpec((K * C, C), lambda b: (0, 0)),       # shared weight
                pl.BlockSpec((NL, 1, C), lambda b: (0, 0, 0)),    # stacked biases
                pl.BlockSpec((NL, L, C), lambda b: (0, 0, 0)),    # LN scales
                pl.BlockSpec((NL, L, C), lambda b: (0, 0, 0)),    # LN shifts
            ],
            out_specs=pl.BlockSpec((Bt, L, C), lambda b: (b, 0, 0)),
        ),
        compiler_params=pltpu.CompilerParams(
            dimension_semantics=("parallel",)),
    )(x, w_cat, bias_st, ln_a_bc, ln_b_bc)


# -------- pure-JAX reference (mirrors the PyTorch forward) --------
def idcnn_block_ref(x, w_oik, biases, ln_a, ln_b, dilations,
                    kernel_size=3, eps=1e-6):
    B, L, C = x.shape
    out = x
    for i, d in enumerate(dilations):
        pad = kernel_size // 2 + d - 1
        xt = jnp.transpose(out, (0, 2, 1))                      # (B, C, L)
        conv = jax.lax.conv_general_dilated(
            xt, w_oik, window_strides=(1,), padding=[(pad, pad)],
            rhs_dilation=(d,), dimension_numbers=("NCH", "OIH", "NCH"))
        conv = conv + biases[i][None, :, None]
        h = jnp.maximum(conv, 0.0)
        mean = h.mean(-1, keepdims=True)
        std = jnp.sqrt(((h - mean) ** 2).sum(-1, keepdims=True) / (L - 1))
        y = ln_a[i] * (h - mean) / (std + eps) + ln_b[i]
        out = jnp.transpose(y + xt, (0, 2, 1))
    return out


if __name__ == "__main__":
    B, L, C, K = 2, 32, 32, 3          # batch, max_length, hidden_size, kernel_size
    dilations = (1, 1, 2)              # `layers` argument of IDCNNBlock
    NL = len(dilations)

    key = jax.random.PRNGKey(0)
    kx, kw, kb, ka, kb2 = jax.random.split(key, 5)

    x = jax.random.normal(kx, (B, L, C), jnp.float32)

    # Shared conv weight (torch layout: [out_ch, in_ch, K]), xavier-normal init.
    fan_in = fan_out = C * K
    std_w = (2.0 / (fan_in + fan_out)) ** 0.5
    w_oik = jax.random.normal(kw, (C, C, K), jnp.float32) * std_w
    w_kio = jnp.transpose(w_oik, (2, 1, 0))          # (K, Cin, Cout)

    bound = 1.0 / (fan_in ** 0.5)                    # torch Conv1d default bias init
    biases = jax.random.uniform(kb, (NL, C), jnp.float32, -bound, bound)
    # LN params init to ones/zeros in the module; perturb slightly so the
    # scale/shift path is actually verified.
    ln_a = 1.0 + 0.1 * jax.random.normal(ka, (NL, L), jnp.float32)
    ln_b = 0.1 * jax.random.normal(kb2, (NL, L), jnp.float32)

    ref = jax.block_until_ready(
        idcnn_block_ref(x, w_oik, biases, ln_a, ln_b, dilations, kernel_size=K))

    # f32 matmul path: strict correctness check.
    out_f32 = jax.block_until_ready(
        idcnn_block(x, w_kio, biases, ln_a, ln_b, dilations, kernel_size=K,
                    act="relu", compute_dtype=jnp.float32))
    np.testing.assert_allclose(np.asarray(out_f32), np.asarray(ref),
                               rtol=1e-3, atol=1e-3)

    # bf16 matmul operands (f32 accumulation): recommended on v6e/v7x; sanity
    # check against the f32 reference with a tolerance matching bf16 inputs.
    out_bf16 = jax.block_until_ready(
        idcnn_block(x, w_kio, biases, ln_a, ln_b, dilations, kernel_size=K,
                    act="relu", compute_dtype=jnp.bfloat16))
    np.testing.assert_allclose(np.asarray(out_bf16), np.asarray(ref),
                               rtol=5e-2, atol=5e-2)

    print("KERNEL_OK")
</pallas_src>

<mosaic_0001>
module attributes {stable_mosaic.version = 11 : i64} {
  func.func @_idcnn_block_kernel(%arg0: i32, %arg1: memref<1x32x32xf32, #tpu.memory_space<vmem>>, %arg2: memref<96x32xf32, #tpu.memory_space<vmem>>, %arg3: memref<3x1x32xf32, #tpu.memory_space<vmem>>, %arg4: memref<3x32x32xf32, #tpu.memory_space<vmem>>, %arg5: memref<3x32x32xf32, #tpu.memory_space<vmem>>, %arg6: memref<1x32x32xf32, #tpu.memory_space<vmem>>) attributes {dimension_semantics = [#tpu.dimension_semantics<parallel>], iteration_bounds = array<i64: 2>, scalar_prefetch = 0 : i64, scratch_operands = 0 : i64, tpu.core_type = #tpu.core_type<tc>, window_params = [{transform_indices = @transform_0, window_bounds = array<i64: 1, 32, 32>}, {pipeline_mode = #tpu.pipeline_mode<synchronous>, transform_indices = @transform_1, window_bounds = array<i64: 96, 32>}, {pipeline_mode = #tpu.pipeline_mode<synchronous>, transform_indices = @transform_2, window_bounds = array<i64: 3, 1, 32>}, {pipeline_mode = #tpu.pipeline_mode<synchronous>, transform_indices = @transform_3, window_bounds = array<i64: 3, 32, 32>}, {pipeline_mode = #tpu.pipeline_mode<synchronous>, transform_indices = @transform_4, window_bounds = array<i64: 3, 32, 32>}, {transform_indices = @transform_5, window_bounds = array<i64: 1, 32, 32>}]} {
    %c0 = arith.constant 0 : index
    %c0_0 = arith.constant 0 : index
    %c0_1 = arith.constant 0 : index
    %0 = vector.load %arg1[%c0, %c0_0, %c0_1] : memref<1x32x32xf32, #tpu.memory_space<vmem>>, vector<1x32x32xf32>
    %c0_2 = arith.constant 0 : index
    %c0_3 = arith.constant 0 : index
    %1 = vector.load %arg2[%c0_2, %c0_3] : memref<96x32xf32, #tpu.memory_space<vmem>>, vector<96x32xf32>
    %cst = arith.constant 0.000000e+00 : f32
    %2 = vector.broadcast %cst : f32 to vector<1x1x32xf32>
    %3 = tpu.concatenate %2, %0, %2 in 1 : vector<1x1x32xf32>, vector<1x32x32xf32>, vector<1x1x32xf32> -> vector<1x34x32xf32>
    %4 = vector.extract_strided_slice %3 {offsets = [0, 0, 0], sizes = [1, 32, 32], strides = [1, 1, 1]} : vector<1x34x32xf32> to vector<1x32x32xf32>
    %5 = vector.extract_strided_slice %3 {offsets = [0, 1, 0], sizes = [1, 32, 32], strides = [1, 1, 1]} : vector<1x34x32xf32> to vector<1x32x32xf32>
    %6 = vector.extract_strided_slice %3 {offsets = [0, 2, 0], sizes = [1, 32, 32], strides = [1, 1, 1]} : vector<1x34x32xf32> to vector<1x32x32xf32>
    %7 = tpu.concatenate %4, %5, %6 in 2 : vector<1x32x32xf32>, vector<1x32x32xf32>, vector<1x32x32xf32> -> vector<1x32x96xf32>
    %8 = vector.shape_cast %7 : vector<1x32x96xf32> to vector<32x96xf32>
    %cst_4 = arith.constant dense<0.000000e+00> : vector<32x32xf32>
    %9 = tpu.matmul %8, %1, %cst_4 {dimension_numbers = #tpu.dot_dimension_numbers<[1], [0], [0], [1], [0, 0, 1, 1], [], []>} : vector<32x96xf32>, vector<96x32xf32>, vector<32x32xf32> -> vector<32x32xf32>
    %10 = vector.shape_cast %9 : vector<32x32xf32> to vector<1x32x32xf32>
    %c0_5 = arith.constant 0 : index
    %c0_6 = arith.constant 0 : index
    %c0_7 = arith.constant 0 : index
    %11 = vector.load %arg3[%c0_5, %c0_6, %c0_7] : memref<3x1x32xf32, #tpu.memory_space<vmem>>, vector<1x1x32xf32>
    %12 = vector.shape_cast %11 : vector<1x1x32xf32> to vector<1x32xf32>
    %13 = vector.shape_cast %12 : vector<1x32xf32> to vector<1x1x32xf32>
    %14 = vector.broadcast %13 : vector<1x1x32xf32> to vector<1x32x32xf32>
    %15 = arith.addf %10, %14 : vector<1x32x32xf32>
    %cst_8 = arith.constant 0.000000e+00 : f32
    %16 = vector.broadcast %cst_8 : f32 to vector<1x32x32xf32>
    %17 = arith.maximumf %15, %16 : vector<1x32x32xf32>
    %cst_9 = arith.constant dense<0.000000e+00> : vector<1x32xf32>
    %18 = vector.multi_reduction <add>, %17, %cst_9 [1] : vector<1x32x32xf32> to vector<1x32xf32>
    %19 = vector.shape_cast %18 : vector<1x32xf32> to vector<1x1x32xf32>
    %cst_10 = arith.constant 3.200000e+01 : f32
    %20 = vector.broadcast %cst_10 : f32 to vector<1x1x32xf32>
    %21 = arith.divf %19, %20 : vector<1x1x32xf32>
    %22 = vector.broadcast %21 : vector<1x1x32xf32> to vector<1x32x32xf32>
    %23 = arith.subf %17, %22 : vector<1x32x32xf32>
    %24 = arith.mulf %23, %23 : vector<1x32x32xf32>
    %cst_11 = arith.constant dense<0.000000e+00> : vector<1x32xf32>
    %25 = vector.multi_reduction <add>, %24, %cst_11 [1] : vector<1x32x32xf32> to vector<1x32xf32>
    %26 = vector.shape_cast %25 : vector<1x32xf32> to vector<1x1x32xf32>
    %cst_12 = arith.constant 3.100000e+01 : f32
    %27 = vector.broadcast %cst_12 : f32 to vector<1x1x32xf32>
    %28 = arith.divf %26, %27 : vector<1x1x32xf32>
    %29 = math.sqrt %28 : vector<1x1x32xf32>
    %cst_13 = arith.constant 9.99999997E-7 : f32
    %30 = vector.broadcast %cst_13 : f32 to vector<1x1x32xf32>
    %31 = arith.addf %29, %30 : vector<1x1x32xf32>
    %32 = tpu.reciprocal %31 : vector<1x1x32xf32> -> vector<1x1x32xf32>
    %c0_14 = arith.constant 0 : index
    %c0_15 = arith.constant 0 : index
    %c0_16 = arith.constant 0 : index
    %33 = vector.load %arg4[%c0_14, %c0_15, %c0_16] : memref<3x32x32xf32, #tpu.memory_space<vmem>>, vector<1x32x32xf32>
    %34 = vector.shape_cast %33 : vector<1x32x32xf32> to vector<32x32xf32>
    %35 = vector.broadcast %21 : vector<1x1x32xf32> to vector<1x32x32xf32>
    %36 = arith.subf %17, %35 : vector<1x32x32xf32>
    %37 = vector.broadcast %32 : vector<1x1x32xf32> to vector<1x32x32xf32>
    %38 = arith.mulf %36, %37 : vector<1x32x32xf32>
    %39 = vector.shape_cast %34 : vector<32x32xf32> to vector<1x32x32xf32>
    %40 = arith.mulf %39, %38 : vector<1x32x32xf32>
    %c0_17 = arith.constant 0 : index
    %c0_18 = arith.constant 0 : index
    %c0_19 = arith.constant 0 : index
    %41 = vector.load %arg5[%c0_17, %c0_18, %c0_19] : memref<3x32x32xf32, #tpu.memory_space<vmem>>, vector<1x32x32xf32>
    %42 = vector.shape_cast %41 : vector<1x32x32xf32> to vector<32x32xf32>
    %43 = vector.shape_cast %42 : vector<32x32xf32> to vector<1x32x32xf32>
    %44 = arith.addf %40, %43 : vector<1x32x32xf32>
    %45 = arith.addf %44, %0 : vector<1x32x32xf32>
    %cst_20 = arith.constant 0.000000e+00 : f32
    %46 = vector.broadcast %cst_20 : f32 to vector<1x1x32xf32>
    %47 = tpu.concatenate %46, %45, %46 in 1 : vector<1x1x32xf32>, vector<1x32x32xf32>, vector<1x1x32xf32> -> vector<1x34x32xf32>
    %48 = vector.extract_strided_slice %47 {offsets = [0, 0, 0], sizes = [1, 32, 32], strides = [1, 1, 1]} : vector<1x34x32xf32> to vector<1x32x32xf32>
    %49 = vector.extract_strided_slice %47 {offsets = [0, 1, 0], sizes = [1, 32, 32], strides = [1, 1, 1]} : vector<1x34x32xf32> to vector<1x32x32xf32>
    %50 = vector.extract_strided_slice %47 {offsets = [0, 2, 0], sizes = [1, 32, 32], strides = [1, 1, 1]} : vector<1x34x32xf32> to vector<1x32x32xf32>
    %51 = tpu.concatenate %48, %49, %50 in 2 : vector<1x32x32xf32>, vector<1x32x32xf32>, vector<1x32x32xf32> -> vector<1x32x96xf32>
    %52 = vector.shape_cast %51 : vector<1x32x96xf32> to vector<32x96xf32>
    %cst_21 = arith.constant dense<0.000000e+00> : vector<32x32xf32>
    %53 = tpu.matmul %52, %1, %cst_21 {dimension_numbers = #tpu.dot_dimension_numbers<[1], [0], [0], [1], [0, 0, 1, 1], [], []>} : vector<32x96xf32>, vector<96x32xf32>, vector<32x32xf32> -> vector<32x32xf32>
    %54 = vector.shape_cast %53 : vector<32x32xf32> to vector<1x32x32xf32>
    %c1 = arith.constant 1 : index
    %c0_22 = arith.constant 0 : index
    %c0_23 = arith.constant 0 : index
    %55 = vector.load %arg3[%c1, %c0_22, %c0_23] : memref<3x1x32xf32, #tpu.memory_space<vmem>>, vector<1x1x32xf32>
    %56 = vector.shape_cast %55 : vector<1x1x32xf32> to vector<1x32xf32>
    %57 = vector.shape_cast %56 : vector<1x32xf32> to vector<1x1x32xf32>
    %58 = vector.broadcast %57 : vector<1x1x32xf32> to vector<1x32x32xf32>
    %59 = arith.addf %54, %58 : vector<1x32x32xf32>
    %cst_24 = arith.constant 0.000000e+00 : f32
    %60 = vector.broadcast %cst_24 : f32 to vector<1x32x32xf32>
    %61 = arith.maximumf %59, %60 : vector<1x32x32xf32>
    %cst_25 = arith.constant dense<0.000000e+00> : vector<1x32xf32>
    %62 = vector.multi_reduction <add>, %61, %cst_25 [1] : vector<1x32x32xf32> to vector<1x32xf32>
    %63 = vector.shape_cast %62 : vector<1x32xf32> to vector<1x1x32xf32>
    %cst_26 = arith.constant 3.200000e+01 : f32
    %64 = vector.broadcast %cst_26 : f32 to vector<1x1x32xf32>
    %65 = arith.divf %63, %64 : vector<1x1x32xf32>
    %66 = vector.broadcast %65 : vector<1x1x32xf32> to vector<1x32x32xf32>
    %67 = arith.subf %61, %66 : vector<1x32x32xf32>
    %68 = arith.mulf %67, %67 : vector<1x32x32xf32>
    %cst_27 = arith.constant dense<0.000000e+00> : vector<1x32xf32>
    %69 = vector.multi_reduction <add>, %68, %cst_27 [1] : vector<1x32x32xf32> to vector<1x32xf32>
    %70 = vector.shape_cast %69 : vector<1x32xf32> to vector<1x1x32xf32>
    %cst_28 = arith.constant 3.100000e+01 : f32
    %71 = vector.broadcast %cst_28 : f32 to vector<1x1x32xf32>
    %72 = arith.divf %70, %71 : vector<1x1x32xf32>
    %73 = math.sqrt %72 : vector<1x1x32xf32>
    %cst_29 = arith.constant 9.99999997E-7 : f32
    %74 = vector.broadcast %cst_29 : f32 to vector<1x1x32xf32>
    %75 = arith.addf %73, %74 : vector<1x1x32xf32>
    %76 = tpu.reciprocal %75 : vector<1x1x32xf32> -> vector<1x1x32xf32>
    %c1_30 = arith.constant 1 : index
    %c0_31 = arith.constant 0 : index
    %c0_32 = arith.constant 0 : index
    %77 = vector.load %arg4[%c1_30, %c0_31, %c0_32] : memref<3x32x32xf32, #tpu.memory_space<vmem>>, vector<1x32x32xf32>
    %78 = vector.shape_cast %77 : vector<1x32x32xf32> to vector<32x32xf32>
    %79 = vector.broadcast %65 : vector<1x1x32xf32> to vector<1x32x32xf32>
    %80 = arith.subf %61, %79 : vector<1x32x32xf32>
    %81 = vector.broadcast %76 : vector<1x1x32xf32> to vector<1x32x32xf32>
    %82 = arith.mulf %80, %81 : vector<1x32x32xf32>
    %83 = vector.shape_cast %78 : vector<32x32xf32> to vector<1x32x32xf32>
    %84 = arith.mulf %83, %82 : vector<1x32x32xf32>
    %c1_33 = arith.constant 1 : index
    %c0_34 = arith.constant 0 : index
    %c0_35 = arith.constant 0 : index
    %85 = vector.load %arg5[%c1_33, %c0_34, %c0_35] : memref<3x32x32xf32, #tpu.memory_space<vmem>>, vector<1x32x32xf32>
    %86 = vector.shape_cast %85 : vector<1x32x32xf32> to vector<32x32xf32>
    %87 = vector.shape_cast %86 : vector<32x32xf32> to vector<1x32x32xf32>
    %88 = arith.addf %84, %87 : vector<1x32x32xf32>
    %89 = arith.addf %88, %45 : vector<1x32x32xf32>
    %cst_36 = arith.constant 0.000000e+00 : f32
    %90 = vector.broadcast %cst_36 : f32 to vector<1x2x32xf32>
    %91 = tpu.concatenate %90, %89, %90 in 1 : vector<1x2x32xf32>, vector<1x32x32xf32>, vector<1x2x32xf32> -> vector<1x36x32xf32>
    %92 = vector.extract_strided_slice %91 {offsets = [0, 0, 0], sizes = [1, 32, 32], strides = [1, 1, 1]} : vector<1x36x32xf32> to vector<1x32x32xf32>
    %93 = vector.extract_strided_slice %91 {offsets = [0, 2, 0], sizes = [1, 32, 32], strides = [1, 1, 1]} : vector<1x36x32xf32> to vector<1x32x32xf32>
    %94 = vector.extract_strided_slice %91 {offsets = [0, 4, 0], sizes = [1, 32, 32], strides = [1, 1, 1]} : vector<1x36x32xf32> to vector<1x32x32xf32>
    %95 = tpu.concatenate %92, %93, %94 in 2 : vector<1x32x32xf32>, vector<1x32x32xf32>, vector<1x32x32xf32> -> vector<1x32x96xf32>
    %96 = vector.shape_cast %95 : vector<1x32x96xf32> to vector<32x96xf32>
    %cst_37 = arith.constant dense<0.000000e+00> : vector<32x32xf32>
    %97 = tpu.matmul %96, %1, %cst_37 {dimension_numbers = #tpu.dot_dimension_numbers<[1], [0], [0], [1], [0, 0, 1, 1], [], []>} : vector<32x96xf32>, vector<96x32xf32>, vector<32x32xf32> -> vector<32x32xf32>
    %98 = vector.shape_cast %97 : vector<32x32xf32> to vector<1x32x32xf32>
    %c2 = arith.constant 2 : index
    %c0_38 = arith.constant 0 : index
    %c0_39 = arith.constant 0 : index
    %99 = vector.load %arg3[%c2, %c0_38, %c0_39] : memref<3x1x32xf32, #tpu.memory_space<vmem>>, vector<1x1x32xf32>
    %100 = vector.shape_cast %99 : vector<1x1x32xf32> to vector<1x32xf32>
    %101 = vector.shape_cast %100 : vector<1x32xf32> to vector<1x1x32xf32>
    %102 = vector.broadcast %101 : vector<1x1x32xf32> to vector<1x32x32xf32>
    %103 = arith.addf %98, %102 : vector<1x32x32xf32>
    %cst_40 = arith.constant 0.000000e+00 : f32
    %104 = vector.broadcast %cst_40 : f32 to vector<1x32x32xf32>
    %105 = arith.maximumf %103, %104 : vector<1x32x32xf32>
    %cst_41 = arith.constant dense<0.000000e+00> : vector<1x32xf32>
    %106 = vector.multi_reduction <add>, %105, %cst_41 [1] : vector<1x32x32xf32> to vector<1x32xf32>
    %107 = vector.shape_cast %106 : vector<1x32xf32> to vector<1x1x32xf32>
    %cst_42 = arith.constant 3.200000e+01 : f32
    %108 = vector.broadcast %cst_42 : f32 to vector<1x1x32xf32>
    %109 = arith.divf %107, %108 : vector<1x1x32xf32>
    %110 = vector.broadcast %109 : vector<1x1x32xf32> to vector<1x32x32xf32>
    %111 = arith.subf %105, %110 : vector<1x32x32xf32>
    %112 = arith.mulf %111, %111 : vector<1x32x32xf32>
    %cst_43 = arith.constant dense<0.000000e+00> : vector<1x32xf32>
    %113 = vector.multi_reduction <add>, %112, %cst_43 [1] : vector<1x32x32xf32> to vector<1x32xf32>
    %114 = vector.shape_cast %113 : vector<1x32xf32> to vector<1x1x32xf32>
    %cst_44 = arith.constant 3.100000e+01 : f32
    %115 = vector.broadcast %cst_44 : f32 to vector<1x1x32xf32>
    %116 = arith.divf %114, %115 : vector<1x1x32xf32>
    %117 = math.sqrt %116 : vector<1x1x32xf32>
    %cst_45 = arith.constant 9.99999997E-7 : f32
    %118 = vector.broadcast %cst_45 : f32 to vector<1x1x32xf32>
    %119 = arith.addf %117, %118 : vector<1x1x32xf32>
    %120 = tpu.reciprocal %119 : vector<1x1x32xf32> -> vector<1x1x32xf32>
    %c2_46 = arith.constant 2 : index
    %c0_47 = arith.constant 0 : index
    %c0_48 = arith.constant 0 : index
    %121 = vector.load %arg4[%c2_46, %c0_47, %c0_48] : memref<3x32x32xf32, #tpu.memory_space<vmem>>, vector<1x32x32xf32>
    %122 = vector.shape_cast %121 : vector<1x32x32xf32> to vector<32x32xf32>
    %123 = vector.broadcast %109 : vector<1x1x32xf32> to vector<1x32x32xf32>
    %124 = arith.subf %105, %123 : vector<1x32x32xf32>
    %125 = vector.broadcast %120 : vector<1x1x32xf32> to vector<1x32x32xf32>
    %126 = arith.mulf %124, %125 : vector<1x32x32xf32>
    %127 = vector.shape_cast %122 : vector<32x32xf32> to vector<1x32x32xf32>
    %128 = arith.mulf %127, %126 : vector<1x32x32xf32>
    %c2_49 = arith.constant 2 : index
    %c0_50 = arith.constant 0 : index
    %c0_51 = arith.constant 0 : index
    %129 = vector.load %arg5[%c2_49, %c0_50, %c0_51] : memref<3x32x32xf32, #tpu.memory_space<vmem>>, vector<1x32x32xf32>
    %130 = vector.shape_cast %129 : vector<1x32x32xf32> to vector<32x32xf32>
    %131 = vector.shape_cast %130 : vector<32x32xf32> to vector<1x32x32xf32>
    %132 = arith.addf %128, %131 : vector<1x32x32xf32>
    %133 = arith.addf %132, %89 : vector<1x32x32xf32>
    %c0_52 = arith.constant 0 : index
    %c0_53 = arith.constant 0 : index
    %c0_54 = arith.constant 0 : index
    %134 = vector.load %arg6[%c0_52, %c0_53, %c0_54] : memref<1x32x32xf32, #tpu.memory_space<vmem>>, vector<1x32x32xf32>
    tpu.vector_store %arg6[%c0_52, %c0_53, %c0_54], %133 {strides = array<i32>} : memref<1x32x32xf32, #tpu.memory_space<vmem>>, vector<1x32x32xf32>,
    return
  }
  func.func @transform_0(%arg0: i32) -> (i32, i32, i32) {
    %c0_i32 = arith.constant 0 : i32
    %c0_i32_0 = arith.constant 0 : i32
    %c0_i32_1 = arith.constant 0 : i32
    return %arg0, %c0_i32, %c0_i32_0 : i32, i32, i32
  }
  func.func @transform_1(%arg0: i32) -> (i32, i32) {
    %c0_i32 = arith.constant 0 : i32
    %c0_i32_0 = arith.constant 0 : i32
    %c0_i32_1 = arith.constant 0 : i32
    return %c0_i32, %c0_i32_0 : i32, i32
  }
  func.func @transform_2(%arg0: i32) -> (i32, i32, i32) {
    %c0_i32 = arith.constant 0 : i32
    %c0_i32_0 = arith.constant 0 : i32
    %c0_i32_1 = arith.constant 0 : i32
    %c0_i32_2 = arith.constant 0 : i32
    return %c0_i32, %c0_i32_0, %c0_i32_1 : i32, i32, i32
  }
  func.func @transform_3(%arg0: i32) -> (i32, i32, i32) {
    %c0_i32 = arith.constant 0 : i32
    %c0_i32_0 = arith.constant 0 : i32
    %c0_i32_1 = arith.constant 0 : i32
    %c0_i32_2 = arith.constant 0 : i32
    return %c0_i32, %c0_i32_0, %c0_i32_1 : i32, i32, i32
  }
  func.func @transform_4(%arg0: i32) -> (i32, i32, i32) {
    %c0_i32 = arith.constant 0 : i32
    %c0_i32_0 = arith.constant 0 : i32
    %c0_i32_1 = arith.constant 0 : i32
    %c0_i32_2 = arith.constant 0 : i32
    return %c0_i32, %c0_i32_0, %c0_i32_1 : i32, i32, i32
  }
  func.func @transform_5(%arg0: i32) -> (i32, i32, i32) {
    %c0_i32 = arith.constant 0 : i32
    %c0_i32_0 = arith.constant 0 : i32
    %c0_i32_1 = arith.constant 0 : i32
    return %arg0, %c0_i32, %c0_i32_0 : i32, i32, i32
  }
}

</mosaic_0001>

<bundles_post_ra>
// kernel: tpu_custom_call.1
= control target key start
LH: loop header
LB: loop body
LE: loop exit
PB: predicated region body
PF: predicated region fallthrough
CT: control target
= control target key end

     0   :  { %10 = vsyncpa [#allocation3], 0  ;;  %s2196_s0 = inlined_call_operand.hbm [shape: f32[2,32,32], index: 0, kind: input, shape index: {}]   ;;  %s2197_s1 = inlined_call_operand.vmem [shape: f32[96,32], index: 1, kind: input, shape index: {}]   ;;  %s2198_s2 = inlined_call_operand.vmem [shape: f32[3,1,32], index: 2, kind: input, shape index: {}]   ;;  %s2199_s3 = inlined_call_operand.vmem [shape: f32[3,32,32], index: 3, kind: input, shape index: {}]   ;;  %s2200_s4 = inlined_call_operand.hbm [shape: f32[3,32,32], index: 4, kind: input, shape index: {}]   ;;  %s2201_s5 = inlined_call_operand.hbm [shape: f32[2,32,32], index: 5, kind: output, shape index: {}]  }
   0x1   :  { %12 = vsyncpa [#allocation3 + $0x1], 0 }
   0x2   :  { %13 = vsyncpa [#allocation6], 0 }
   0x3   :  { %14 = vsyncpa [#allocation4], 0 }
   0x4   :  { %16 = vsyncpa [#allocation4 + $0x1], 0  ;;  %s1653_s18 = smov 0   ;;  %s1655_s19 = smov 0  }
   0x5   :  { %s1657_s20 = smov 0   ;;  %s1659_s21 = smov 0  }
   0x6 LB: > { %s1674_s22 = sadd.s32 4294967295, %s1612_s21   ;;  %s1144_s23 = sadd.s32 4294967294, %s1612_s21   ;;  %s1612_s21 = sphi %s1659_s21, %s2221_s21   ;;  %s1608_s20 = sphi %s1657_s20, %s2220_s20   ;;  %s1604_s19 = sphi %s1655_s19, %s2219_s19   ;;  %s1600_s18 = sphi %s1653_s18, %s2218_s18  }
   0x7   : > { %p42_p0 = scmp.ne.s32.totalorder %s1604_s19, %s1600_s18  ;;  %p2202_p1 = scmp.eq.s32.totalorder %s1674_s22, 0 }
   0x8   : > { %p156_p3 = scmp.eq.s32.totalorder %s1144_s23, 1  ;;  %p1145_p5 = scmp.ge.s32.totalorder %s1612_s21, 1 }
   0x9   : > { %p1683_p4 = por %p2202_p1, %p42_p0  ;;  %p163_p7 = scmp.lt.s32.totalorder %s1612_s21, 3 }
   0xa   : > { %p1688_p6 = por %p156_p3, %p42_p0  ;;  %s1614_s27 = smov [#allocation5]  }
   0xb   : > { %s2205_s24 = scalar_select %p1683_p4, 1, 0 }
   0xc   : > { %s2206_s25 = scalar_select %p1688_p6, 1, 0 }
   0xd   : > { %p1693_p8 = pnand %p1145_p5, %p163_p7  ;;  %s184_s28 = sshll.u32 %s1614_s27, 4  ;;  %s1697_s28 = int_to_ptr.vmem [resolvable:$true] %s184_s28 }
   0xe   : > { %s1709_s30 = sadd.s32 1, %s1612_s21   ;;  %s29_s6 = sadd.s32 1, %s1608_s20 }
   0xf   : > { %s2207_s26 = scalar_select %p1693_p8, 1, 0 }
  0x10   : > { %p1417_p9 = pneg %p1693_p8  ;;  %s26_s7 = ssub.s32 %s1612_s21, %s1709_s30 }
  0x11   : > { %s1484_s10 = scalar_lea.hbm %s2200_s4, 1536 }
  0x12   : > { %p1704_p11 = pnand %p1417_p9, %p2202_p1  ;;  %p1485_p12 = scmp.ne.s32.totalorder %s2200_s4, %s1484_s10 }
  0x13   : > { %p1491_p5 = scmp.lt.u32.totalorder %s1484_s10, %s2200_s4 }
  0x14   : > { %p1486_p13 = pneg %p1704_p11 }
  0x16   : > { %p1487_p0 = pnand %p1486_p13, %p1485_p12 }
  0x18   : > { %p1488_p3 = pneg %p1487_p0 }
  0x1a   : > { %p1493_p7 = pnand %p1491_p5, %p1488_p3 }
  0x1c   : > { %1496 = shalt.err (!%p1493_p7)
}
  0x1d   : > { %s1497_s15 = scalar_lea.vmem %s1697_s28, 1536  ;;  %p1505_p2 = scmp.lt.s32.totalorder %s1697_s28, %s1697_s28 }
  0x1e   : > { %p1498_p9 = scmp.ne.s32.totalorder %s1697_s28, %s1497_s15  ;;  %p1506_p6 = scmp.lt.s32.totalorder %s1497_s15, %s1497_s15 }
  0x20   : > { %p1500_p10 = pnand %p1498_p9, %p1486_p13  ;;  %p1507_p4 = por %p1506_p6, %p1505_p2 }
  0x22   : > { %p1501_p1 = pneg %p1500_p10 }
  0x24   : > { %p1508_p8 = pnand %p1507_p4, %p1501_p1 }
  0x26   : > { %1511 = shalt.err (!%p1508_p8)
}
  0x27   : > { %s1615_s16 = smov 128   ;;  %s1616_s17 = smov 8  }
  0x28   : > { %1420 = dma.hbm_to_vmem [thread:$0]  (!%p1704_p11), %s2200_s4, 1536, %s1697_s28, [#allocation6], %s1615_s16, %s1615_s16, %s1616_s17  }
  0x29   : > { %p27_p1 = scmp.eq.s32.totalorder %s26_s7, 0  ;;  %p36_p2 = scmp.ne.s32.totalorder %s1608_s20, %s1604_s19 }
  0x2a   : > { %p37_p4 = scmp.eq.s32.totalorder %s1612_s21, 0  ;;  %p1430_p6 = scmp.lt.s32.totalorder %s1612_s21, 2 }
  0x2b   : > { %s1743_s8 = scalar_select %p27_p1, %s1608_s20, %s29_s6  }
  0x2c   : > { %p38_p8 = por %p37_p4, %p36_p2  ;;  %p2209_p10 = scmp.eq.s32.totalorder %s1674_s22, 1 }
  0x2d   : > { %s198_s29 = sand.u32 1, %s1608_s20   ;;  %s1185_s10 = sshll.u32 %s1612_s21, 9 }
  0x2e   : > { %p1747_p12 = por %p2209_p10, %p36_p2  ;;  %s1148_s11 = sshll.u32 %s198_s29, 5 }
  0x2f   : > { %s1756_s14 = scalar_lea.hbm %s2196_s0, %s1185_s10  ;;  %s202_s28 = scalar_lea.vmem [#allocation2], %s1148_s11 }
  0x30   : > { %s209_s6 = sshll.u32 %s202_s28, 4  ;;  %p1758_p11 = pnand %p1430_p6, %p38_p8  ;;  %s1762_s6 = int_to_ptr.vmem [resolvable:$true] %s209_s6 }
  0x31   : > { %s1764_s15 = scalar_lea.sflag [#allocation3], %s198_s29  ;;  %s1512_s23 = scalar_lea.hbm %s1756_s14, 512 }
  0x32   : > { %p1513_p13 = scmp.ne.s32.totalorder %s1756_s14, %s1512_s23  ;;  %p1514_p0 = pneg %p1758_p11 }
  0x33   : > { %s1517_s11 = scalar_lea.hbm %s2196_s0, 1024  ;;  %p1518_p7 = scmp.lt.u32.totalorder %s1756_s14, %s2196_s0 }
  0x34   : > { %p1515_p3 = pnand %p1514_p0, %p1513_p13  ;;  %p1519_p9 = scmp.lt.u32.totalorder %s1517_s11, %s1512_s23 }
  0x35   : > { %p1521_p2 = scmp.lt.u32.totalorder %s1512_s23, %s1756_s14 }
  0x36   : > { %p1516_p5 = pneg %p1515_p3  ;;  %p1520_p1 = por %p1519_p9, %p1518_p7 }
  0x38   : > { %p1522_p4 = por %p1521_p2, %p1520_p1 }
  0x3a   : > { %p1523_p6 = pnand %p1522_p4, %p1516_p5 }
  0x3c   : > { %1526 = shalt.err (!%p1523_p6)
}
  0x3d   : > { %s1527_s29 = scalar_lea.vmem %s1762_s6, 512  ;;  %s1617_s28 = smov [#allocation2]  }
  0x3e   : > { %p1528_p8 = scmp.ne.s32.totalorder %s1762_s6, %s1527_s29  ;;  %s1532_s27 = sshll.u32 %s1617_s28, 4  ;;  %s1533_s27 = int_to_ptr.vmem [resolvable:$false] %s1532_s27 }
  0x3f   : > { %s1534_s10 = scalar_lea.vmem %s1533_s27, 1024  ;;  %p1535_p3 = scmp.lt.s32.totalorder %s1762_s6, %s1533_s27 }
  0x40   : > { %p1530_p10 = pnand %p1528_p8, %p1514_p0  ;;  %p1536_p7 = scmp.lt.s32.totalorder %s1534_s10, %s1527_s29 }
  0x42   : > { %p1531_p13 = pneg %p1530_p10  ;;  %p1537_p9 = por %p1536_p7, %p1535_p3 }
  0x44   : > { %p1538_p1 = pnand %p1537_p9, %p1531_p13 }
  0x46   : > { %1541 = shalt.err (!%p1538_p1)
}
  0x47   : > { %1424 = dma.hbm_to_vmem [thread:$0]  (!%p1758_p11), %s1756_s14, 512, %s1762_s6, %s1764_s15, %s1615_s16, %s1615_s16, %s1616_s17  }
  0x48   : > { %p2212_p0 = scmp.ne.s32.totalorder %s2207_s26, 0 }
  0x49   : > { %s1798_s23 = sand.u32 (!%p2212_p0), 1, %s1604_s19   ;;  %p2213_p5 = scmp.ne.s32.totalorder (!%p2212_p0), %s2205_s24, 0 }
  0x4a   : > { %221 = sbr.rel (%p2212_p0) target bundleno = 1399 (0x577), region = 40  ;;  %s1152_s11 = sshll.u32 (!%p2212_p0), %s1798_s23, 5 }
  0x4b   : > { %s224_s12 = scalar_lea.sflag (!%p2212_p0), [#allocation3], %s1798_s23  ;;  %s227_s7 = scalar_lea.vmem (!%p2212_p0), [#allocation2], %s1152_s11 }
  0x51   : > { %1587 = dma.done.wait (%p2213_p5), %s224_s12, 512  }
  0x52   : > { %1589 = vsyncadd (%p2213_p5), %s224_s12, 4294966784  ;;  %p2214_p11 = scmp.eq.s32.totalorder %s1674_s22, 0 }
  0x54   : > { %1591 = dma.done.wait (%p2214_p11), [#allocation6], 1536   ;;  %p2215_p2 = pmov %p2214_p11 }
  0x55   : > { %v1812_v0 = vld [vmem:[%s227_s7] sm:$0xff]  ;;  %v1814_v1 = vld [vmem:[%s227_s7 + $0x8] sm:$0xff]  ;;  %vm278_vm0 = vcmask 1040384   ;;  %v1816_v2 = vld [vmem:[%s227_s7 + $0x10] sm:$0xff]  ;;  %vm317_vm1 = vcmask 1045504   ;;  %vm295_vm2 = vcmask 1046528  }
  0x56   : > { %1593 = vsyncadd (%p2215_p2), [#allocation6], 4294965760  ;;  %v279_v3 = vrot.slane %v1812_v0, 7  ;;  %v280_v4 = vrot.slane %v1814_v1, 7  ;;  %v282_v5 = vrot.slane %v1816_v2, 7  ;;  %v1821_v6 = vld [vmem:[%s227_s7 + $0x18] sm:$0xff] }
  0x57   : > { %v262_v7 = vld [vmem:[%s2197_s1] sm:$0xff]  ;;  %v263_v8 = vld [vmem:[%s2197_s1 + $0x8] sm:$0xff]  ;;  %v284_v9 = vrot.slane %v1821_v6, 7  ;;  %v264_v11 = vld [vmem:[%s2197_s1 + $0x10] sm:$0xff]  ;;  %s1618_s12 = smov 64   ;;  %s1619_s7 = smov 32  }
  0x58   : > { %v1830_v10 = vpack.c.bf16 %v263_v8, %v262_v7  ;;  %v265_v12 = vld [vmem:[%s2197_s1 + $0x18] sm:$0xff]  ;;  %v1839_v13 = vsel %vm278_vm0, %v279_v3, %v280_v4  ;;  %v1842_v14 = vsel %vm278_vm0, 0.0, %v279_v3  ;;  %v1845_v15 = vsel %vm278_vm0, %v280_v4, %v282_v5  ;;  %v266_v25 = vld [vmem:[%s2197_s1 + $0x20] sm:$0xff]  ;;  %v267_v26 = vld [vmem:[%s2197_s1 + $0x28] sm:$0xff]  ;;  %s1186_s14 = sshll.u32 %s1674_s22, 9  ;;  %s257_s6 = scalar_lea.vmem [#allocation7], %s1152_s11 }
  0x59   : > { %v1847_v16 = vpack.c.bf16 %v265_v12, %v264_v11  ;;  %v318_v17 = vrot.slane %v1842_v14, 2  ;;  %v319_v18 = vrot.slane %v1839_v13, 2  ;;  %v296_v19 = vrot.slane %v1842_v14, 1  ;;  %v268_v30 = vld [vmem:[%s2197_s1 + $0x30] sm:$0xff]  ;;  %v269_v31 = vld [vmem:[%s2197_s1 + $0x38] sm:$0xff]  ;;  %v270_v37 = vld [vmem:[%s2197_s1 + $0x40] sm:$0xff] }
  0x5a   : > { %v297_v20 = vrot.slane %v1839_v13, 1  ;;  %1326 = vmatprep.subr.bf16.mxu0 %v1830_v10  ;;  %1350 = vmatprep.subr.bf16.mxu1 %v1830_v10  ;;  %v321_v21 = vrot.slane %v1845_v15, 2  ;;  %v299_v22 = vrot.slane %v1845_v15, 1  ;;  %v1858_v23 = vsel %vm278_vm0, %v282_v5, %v284_v9  ;;  %v271_v38 = vld [vmem:[%s2197_s1 + $0x48] sm:$0xff]  ;;  %v272_v44 = vld [vmem:[%s2197_s1 + $0x50] sm:$0xff]  ;;  %v273_v45 = vld [vmem:[%s2197_s1 + $0x58] sm:$0xff] }
  0x5b   : > { %v292_v24 = vsel %vm278_vm0, %v284_v9, 0.0  ;;  %1328 = vmatpush3.bf16.msra.mxu0 %v1830_v10  ;;  %1352 = vmatpush3.bf16.msra.mxu1 %v1830_v10  ;;  %v320_v27 = vsel %vm317_vm1, %v318_v17, %v319_v18  ;;  %v301_v29 = vrot.slane %v1858_v23, 1  ;;  %v1884_v35 = vpack.c.bf16 %v267_v26, %v266_v25  ;;  %v1159_v4 = vld [vmem:[%s2198_s2] ss:$0 sm:$0xff]  ;;  %s1061_s15 = sshll.u32 %s257_s6, 4  ;;  %s1048_s22 = scalar_lea.sflag [#allocation4], %s1798_s23  ;;  %s2144_s15 = int_to_ptr.vmem [resolvable:$true] %s1061_s15 }
  0x5c   : > { %v298_v28 = vsel %vm295_vm2, %v296_v19, %v297_v20  ;;  %1330 = vmatprep.subr.bf16.mxu0 %v1847_v16  ;;  %1354 = vmatprep.subr.bf16.mxu1 %v1847_v16  ;;  %v322_v32 = vsel %vm317_vm1, %v319_v18, %v321_v21  ;;  %v300_v33 = vsel %vm295_vm2, %v297_v20, %v299_v22  ;;  %v303_v34 = vrot.slane %v292_v24, 1  ;;  %s1542_s11 = scalar_lea.vmem %s2144_s15, 512  ;;  %s1620_s29 = smov [#allocation7]  }
  0x5d   : > { %327 = vrot.lane.b32.xlu1 %v320_v27, %s1618_s12  ;;  %305 = vrot.lane.b32.xlu0 %v298_v28, %s1619_s7  ;;  %v1888_v36 = vpack.c.bf16 %v269_v31, %v268_v30  ;;  %v302_v40 = vsel %vm295_vm2, %v299_v22, %v301_v29  ;;  %v323_v41 = vrot.slane %v1858_v23, 2  ;;  %v325_v42 = vrot.slane %v292_v24, 2  ;;  %p1543_p4 = scmp.ne.s32.totalorder %s2144_s15, %s1542_s11  ;;  %s1546_s28 = sshll.u32 %s1620_s29, 4  ;;  %s1547_s28 = int_to_ptr.vmem [resolvable:$false] %s1546_s28 }
  0x5e   : > { %v304_v39 = vsel %vm295_vm2, %v301_v29, %v303_v34  ;;  %v1905_v43 = vpack.c.bf16 %v271_v38, %v270_v37  ;;  %v1921_v48 = vpack.c.bf16 %v273_v45, %v272_v44  ;;  %vm339_vm3 = vcmask 261120   ;;  %s1548_s27 = scalar_lea.vmem %s1547_s28, 1024  ;;  %p1549_p10 = scmp.lt.s32.totalorder %s2144_s15, %s1547_s28 }
  0x5f   : > { %1332 = vmatpush3.bf16.msra.mxu0 %v1847_v16  ;;  %1356 = vmatpush3.bf16.msra.mxu1 %v1847_v16  ;;  %v326_v46 = vsel %vm317_vm1, %v323_v41, %v325_v42  ;;  %v324_v47 = vsel %vm317_vm1, %v321_v21, %v323_v41  ;;  %vm344_vm4 = vcmask 523264   ;;  %vm349_vm5 = vcmask 785408   ;;  %p1544_p6 = pnand %p1543_p4, %p1747_p12  ;;  %p1550_p13 = scmp.lt.s32.totalorder %s1548_s27, %s1542_s11 }
  0x60   : > { %1334 = vmatprep.subr.bf16.mxu0 %v1884_v35  ;;  %1358 = vmatprep.subr.bf16.mxu1 %v1884_v35  ;;  %vm791_vm10 = vcmask 1041408   ;;  %vm829_vm11 = vcmask 1043456  }
  0x61   : > { %329 = vrot.lane.b32.xlu1 %v322_v32, %s1618_s12  ;;  %307 = vrot.lane.b32.xlu0 %v300_v33, %s1619_s7  ;;  %p1545_p8 = pneg %p1544_p6  ;;  %p1551_p3 = por %p1550_p13, %p1549_p10 }
  0x63   : > { %1336 = vmatpush3.bf16.msra.mxu0 %v1884_v35  ;;  %1360 = vmatpush3.bf16.msra.mxu1 %v1884_v35  ;;  %p1552_p7 = pnand %p1551_p3, %p1545_p8 }
  0x64   : > { %1338 = vmatprep.subr.bf16.mxu0 %v1888_v36  ;;  %1362 = vmatprep.subr.bf16.mxu1 %v1888_v36 }
  0x65   : > { %311 = vrot.lane.b32.xlu1 %v304_v39, %s1619_s7  ;;  %309 = vrot.lane.b32.xlu0 %v302_v40, %s1619_s7 }
  0x67   : > { %1340 = vmatpush3.bf16.msra.mxu0 %v1888_v36  ;;  %1364 = vmatpush3.bf16.msra.mxu1 %v1888_v36 }
  0x68   : > { %1342 = vmatprep.subr.bf16.mxu0 %v1905_v43  ;;  %1366 = vmatprep.subr.bf16.mxu1 %v1905_v43 }
  0x69   : > { %333 = vrot.lane.b32.xlu1 %v326_v46, %s1618_s12  ;;  %331 = vrot.lane.b32.xlu0 %v324_v47, %s1618_s12 }
  0x6b   : > { %1344 = vmatpush3.bf16.msra.mxu0 %v1905_v43  ;;  %1368 = vmatpush3.bf16.msra.mxu1 %v1905_v43 }
  0x6c   : > { %1346 = vmatprep.subr.bf16.mxu0 %v1921_v48  ;;  %1370 = vmatprep.subr.bf16.mxu1 %v1921_v48 }
  0x6f   : > { %1348 = vmatpush3.bf16.msra.mxu0 %v1921_v48  ;;  %1372 = vmatpush3.bf16.msra.mxu1 %v1921_v48 }
  0x70   : > { %1374 = vmatprep.subr.bf16.mxu0 %v1830_v10  ;;  %1397 = vmatprep.subr.bf16.mxu1 %v1830_v10 }
  0xcf   : > { %v328_v49 = vpop.permute.xlu1 %327  ;;  %v306_v50 = vpop.permute.xlu0 %305 }
  0xd0   : > { %v340_v51 = vsel %vm339_vm3, %v1842_v14, %v306_v50 }
  0xd1   : > { %v345_v52 = vsel %vm344_vm4, %v340_v51, %v328_v49 }
  0xd2   : > { %1259 = vmatprep.mubr.msk.f32.mxu0 %vm349_vm5, %v345_v52 }
  0xd3   : > { %v330_v53 = vpop.permute.xlu1 %329  ;;  %v308_v54 = vpop.permute.xlu0 %307 }
  0xd4   : > { %v341_v55 = vsel %vm339_vm3, %v1839_v13, %v308_v54 }
  0xd5   : > { %v346_v56 = vsel %vm344_vm4, %v341_v55, %v330_v53 }
  0xd6   : > { %1260 = vmatmul.mubr.msk.f32.vlgmr.msra.gmra.mrb[0].mxu0 %vm349_vm5, %v346_v56 }
  0xd7   : > { %v312_v57 = vpop.permute.xlu1 %311  ;;  %v310_v58 = vpop.permute.xlu0 %309  ;;  %1376 = vmatpush3.bf16.msra.mxu0 %v1830_v10 }
  0xd8   : > { %1378 = vmatprep.subr.bf16.mxu0 %v1847_v16  ;;  %v343_v59 = vsel %vm339_vm3, %v1858_v23, %v312_v57  ;;  %v342_v60 = vsel %vm339_vm3, %v1845_v15, %v310_v58 }
  0xdb   : > { %v334_v61 = vpop.permute.xlu1 %333  ;;  %v332_v62 = vpop.permute.xlu0 %331  ;;  %1380 = vmatpush3.bf16.msra.mxu0 %v1847_v16 }
  0xdc   : > { %v348_v63 = vsel %vm344_vm4, %v343_v59, %v334_v61  ;;  %v347_v3 = vsel %vm344_vm4, %v342_v60, %v332_v62  ;;  %1382 = vmatprep.subr.bf16.mxu0 %v1884_v35 }
  0xdd   : > { %1262 = vmatprep.mubr.msk.f32.mxu0 %vm349_vm5, %v347_v3 }
  0xde   : > { %1263 = vmatmul.mubr.msk.f32.gmra.mrb[2].mxu0 %vm349_vm5, %v348_v63 }
  0xdf   : > { %1384 = vmatpush3.bf16.msra.mxu0 %v1884_v35 }
  0xe0   : > { %1386 = vmatprep.subr.bf16.mxu0 %v1888_v36 }
  0xe3   : > { %1388 = vmatpush3.bf16.msra.mxu0 %v1888_v36 }
  0xe4   : > { %1390 = vmatprep.subr.bf16.mxu0 %v1905_v43 }
  0xe7   : > { %1392 = vmatpush3.bf16.msra.mxu0 %v1905_v43 }
  0xe8   : > { %1394 = vmatprep.subr.bf16.mxu0 %v1921_v48 }
  0xeb   : > { %1396 = vmatpush3.bf16.msra.mxu0 %v1921_v48 }
 0x1a9   : > { %v1261_v5 = vpop.f32.mrb[0].mxu0 }
 0x1aa   : > { %v455_v7 = vadd.f32 %v1261_v5, %v1159_v4  ;;  %v428_v8 = vpop.f32.mrb[1].mxu0  ;;  %v511_v5 = vld [vmem:[%s2199_s3 + $0x10] sm:$0xff] }
 0x1ab   : > { %v454_v9 = vadd.f32 %v1159_v4, %v428_v8  ;;  %v509_v8 = vld [vmem:[%s2199_s3] sm:$0xff] }
 0x1ac   : > { %v459_v11 = vmax.f32 %v455_v7, 0.0 }
 0x1ad   : > { %v458_v12 = vmax.f32 %v454_v9, 0.0  ;;  %v510_v9 = vld [vmem:[%s2199_s3 + $0x8] sm:$0xff] }
 0x1ae   : > { %v463_v13 = vsel %vm339_vm3, %v459_v11, 0.0 }
 0x1af   : > { %v462_v14 = vsel %vm339_vm3, %v458_v12, 0.0 }
 0x1b0   : > { %v464_v15 = vadd.f32 %v463_v13, %v462_v14 }
 0x1b1   : > { %v1264_v17 = vpop.f32.mrb[2].mxu0 }
 0x1b2   : > { %v457_v18 = vadd.f32 %v1264_v17, %v1159_v4  ;;  %v438_v19 = vpop.f32.mrb[3].mxu0  ;;  %v523_v17 = vld [vmem:[#allocation5 + $0x10] sm:$0xff] }
 0x1b3   : > { %v456_v20 = vadd.f32 %v1159_v4, %v438_v19  ;;  %v522_v19 = vld [vmem:[#allocation5 + $0x8] sm:$0xff] }
 0x1b4   : > { %v461_v21 = vmax.f32 %v457_v18, 0.0  ;;  %v521_v18 = vld [vmem:[#allocation5] sm:$0xff] }
 0x1b5   : > { %v460_v22 = vmax.f32 %v456_v20, 0.0  ;;  %v524_v20 = vld [vmem:[#allocation5 + $0x18] sm:$0xff] }
 0x1b6   : > { %v467_v25 = vsel %vm339_vm3, %v461_v21, 0.0 }
 0x1b7   : > { %v465_v23 = vsel %vm339_vm3, %v460_v22, 0.0 }
 0x1b8   : > { %v466_v24 = vadd.f32 %v465_v23, %v464_v15 }
 0x1ba   : > { %v468_v26 = vadd.f32 %v467_v25, %v466_v24 }
 0x1bc   : > { %v469_v27 = vrot.slane %v468_v26, 4 }
 0x1be   : > { %v470_v28 = vadd.f32 %v469_v27, %v468_v26 }
 0x1c0   : > { %v471_v29 = vrot.slane %v470_v28, 2 }
 0x1c2   : > { %v472_v30 = vadd.f32 %v471_v29, %v470_v28 }
 0x1c4   : > { %v473_v31 = vrot.slane %v472_v30, 1 }
 0x1c6   : > { %v474_v32 = vadd.f32 %v473_v31, %v472_v30 }
 0x1c8   : > { %v476_v33 = vmul.f32 0.03125, %v474_v32 }
 0x1ca   : > { %v477_v34 = vsub.f32 %v458_v12, %v476_v33  ;;  %v478_v37 = vsub.f32 %v459_v11, %v476_v33  ;;  %v479_v38 = vsub.f32 %v460_v22, %v476_v33  ;;  %v480_v39 = vsub.f32 %v461_v21, %v476_v33  ;;  %v512_v11 = vld [vmem:[%s2199_s3 + $0x18] sm:$0xff] }
 0x1cc   : > { %v481_v40 = vmul.f32 %v477_v34, %v477_v34  ;;  %v482_v41 = vmul.f32 %v478_v37, %v478_v37  ;;  %v483_v42 = vmul.f32 %v479_v38, %v479_v38  ;;  %v484_v44 = vmul.f32 %v480_v39, %v480_v39 }
 0x1ce   : > { %v485_v45 = vsel %vm339_vm3, %v481_v40, 0.0  ;;  %v486_v46 = vsel %vm339_vm3, %v482_v41, 0.0  ;;  %v488_v49 = vsel %vm339_vm3, %v483_v42, 0.0  ;;  %v490_v51 = vsel %vm339_vm3, %v484_v44, 0.0 }
 0x1cf   : > { %v487_v47 = vadd.f32 %v486_v46, %v485_v45 }
 0x1d1   : > { %v489_v50 = vadd.f32 %v488_v49, %v487_v47 }
 0x1d3   : > { %v491_v52 = vadd.f32 %v490_v51, %v489_v50 }
 0x1d5   : > { %v492_v53 = vrot.slane %v491_v52, 4 }
 0x1d7   : > { %v493_v54 = vadd.f32 %v492_v53, %v491_v52 }
 0x1d9   : > { %v494_v55 = vrot.slane %v493_v54, 2 }
 0x1db   : > { %v495_v56 = vadd.f32 %v494_v55, %v493_v54 }
 0x1dd   : > { %v496_v57 = vrot.slane %v495_v56, 1 }
 0x1df   : > { %v497_v58 = vadd.f32 %v496_v57, %v495_v56 }
 0x1e1   : > { %v499_v59 = vmul.f32 0.032258064, %v497_v58 }
 0x1e3   : > { %1472 = vrsqrt.f32 %v499_v59  ;;  %vm502_vm6 = vcmp.eq.f32.partialorder %v499_v59, inf  ;;  %v505_v62 = vand.u32 2147483648, %v499_v59  ;;  %vm504_vm7 = vcmp.eq.f32.partialorder %v499_v59, 0.0 }
 0x1ed   : > { %v1473_v60 = vpop.eup %1472 }
 0x1ee   : > { %v501_v61 = vmul.f32 %v1473_v60, %v499_v59 }
 0x1f0   : > { %v503_v63 = vsel %vm502_vm6, %v499_v59, %v501_v61 }
 0x1f1   : > { %v506_v3 = vsel %vm504_vm7, %v505_v62, %v503_v63 }
 0x1f2   : > { %v507_v4 = vadd.f32 1e-06, %v506_v3 }
 0x1f4   : > { %1474 = vrcp.f32 %v507_v4 }
 0x1fe   : > { %v1475_v7 = vpop.eup %1474 }
 0x1ff   : > { %v513_v12 = vmul.f32 %v1475_v7, %v477_v34  ;;  %v514_v13 = vmul.f32 %v1475_v7, %v478_v37  ;;  %v515_v14 = vmul.f32 %v1475_v7, %v479_v38  ;;  %v516_v15 = vmul.f32 %v1475_v7, %v480_v39 }
 0x201   : > { %v519_v21 = vmul.f32 %v515_v14, %v511_v5  ;;  %v517_v22 = vmul.f32 %v513_v12, %v509_v8  ;;  %v518_v23 = vmul.f32 %v514_v13, %v510_v9  ;;  %v520_v24 = vmul.f32 %v516_v15, %v512_v11 }
 0x203   : > { %v527_v25 = vadd.f32 %v523_v17, %v519_v21  ;;  %v525_v26 = vadd.f32 %v521_v18, %v517_v22  ;;  %v526_v27 = vadd.f32 %v522_v19, %v518_v23  ;;  %v528_v28 = vadd.f32 %v524_v20, %v520_v24 }
 0x205   : > { %v1986_v29 = vadd.f32 %v527_v25, %v1816_v2  ;;  %v1989_v30 = vadd.f32 %v525_v26, %v1812_v0  ;;  %v1992_v31 = vadd.f32 %v526_v27, %v1814_v1  ;;  %v1995_v32 = vadd.f32 %v528_v28, %v1821_v6 }
 0x207   : > { %v537_v33 = vrot.slane %v1989_v30, 7  ;;  %v538_v34 = vrot.slane %v1992_v31, 7  ;;  %v540_v37 = vrot.slane %v1986_v29, 7  ;;  %v542_v0 = vrot.slane %v1995_v32, 7 }
 0x209   : > { %v539_v38 = vsel %vm278_vm0, %v537_v33, %v538_v34  ;;  %v541_v2 = vsel %vm278_vm0, %v538_v34, %v540_v37  ;;  %v549_v39 = vsel %vm278_vm0, 0.0, %v537_v33  ;;  %v543_v47 = vsel %vm278_vm0, %v540_v37, %v542_v0 }
 0x20a   : > { %v554_v40 = vrot.slane %v539_v38, 1  ;;  %v556_v1 = vrot.slane %v541_v2, 1  ;;  %v553_v41 = vrot.slane %v549_v39, 1  ;;  %v575_v42 = vrot.slane %v539_v38, 2 }
 0x20b   : > { %v577_v45 = vrot.slane %v541_v2, 2  ;;  %v574_v46 = vrot.slane %v549_v39, 2  ;;  %v550_v49 = vsel %vm278_vm0, %v542_v0, 0.0  ;;  %v558_v52 = vrot.slane %v543_v47, 1 }
 0x20c   : > { %v557_v6 = vsel %vm295_vm2, %v554_v40, %v556_v1  ;;  %v555_v44 = vsel %vm295_vm2, %v553_v41, %v554_v40  ;;  %v560_v53 = vrot.slane %v550_v49, 1  ;;  %v579_v56 = vrot.slane %v543_v47, 2 }
 0x20d   : > { %564 = vrot.lane.b32.xlu1 %v557_v6, %s1619_s7  ;;  %562 = vrot.lane.b32.xlu0 %v555_v44, %s1619_s7  ;;  %v578_v50 = vsel %vm317_vm1, %v575_v42, %v577_v45  ;;  %v576_v51 = vsel %vm317_vm1, %v574_v46, %v575_v42  ;;  %v559_v55 = vsel %vm295_vm2, %v556_v1, %v558_v52  ;;  %v581_v57 = vrot.slane %v550_v49, 2 }
 0x20e   : > { %v561_v54 = vsel %vm295_vm2, %v558_v52, %v560_v53  ;;  %v580_v59 = vsel %vm317_vm1, %v577_v45, %v579_v56 }
 0x20f   : > { %v582_v58 = vsel %vm317_vm1, %v579_v56, %v581_v57 }
 0x211   : > { %585 = vrot.lane.b32.xlu1 %v578_v50, %s1618_s12  ;;  %583 = vrot.lane.b32.xlu0 %v576_v51, %s1618_s12 }
 0x215   : > { %568 = vrot.lane.b32.xlu1 %v561_v54, %s1619_s7  ;;  %566 = vrot.lane.b32.xlu0 %v559_v55, %s1619_s7 }
 0x219   : > { %589 = vrot.lane.b32.xlu1 %v582_v58, %s1618_s12  ;;  %587 = vrot.lane.b32.xlu0 %v580_v59, %s1618_s12 }
 0x27f   : > { %v565_v60 = vpop.permute.xlu1 %564  ;;  %v563_v61 = vpop.permute.xlu0 %562 }
 0x280   : > { %v596_v62 = vsel %vm339_vm3, %v539_v38, %v565_v60  ;;  %v595_v63 = vsel %vm339_vm3, %v549_v39, %v563_v61 }
 0x283   : > { %v586_v3 = vpop.permute.xlu1 %585  ;;  %v584_v4 = vpop.permute.xlu0 %583 }
 0x284   : > { %v600_v5 = vsel %vm344_vm4, %v596_v62, %v586_v3  ;;  %v599_v7 = vsel %vm344_vm4, %v595_v63, %v584_v4 }
 0x285   : > { %1289 = vmatprep.mubr.msk.f32.mxu1 %vm349_vm5, %v599_v7 }
 0x286   : > { %1290 = vmatmul.mubr.msk.f32.vlgmr.msra.gmra.mrb[0].mxu1 %vm349_vm5, %v600_v5 }
 0x287   : > { %v569_v8 = vpop.permute.xlu1 %568  ;;  %v567_v9 = vpop.permute.xlu0 %566  ;;  %1403 = vmatpush3.bf16.msra.mxu1 %v1830_v10  ;;  %v1165_v10 = vld [vmem:[%s2198_s2 + $0x1] ss:$0 sm:$0xff] }
 0x288   : > { %1398 = vmatprep.subr.bf16.mxu1 %v1847_v16  ;;  %v598_v11 = vsel %vm339_vm3, %v543_v47, %v569_v8  ;;  %v597_v12 = vsel %vm339_vm3, %v541_v2, %v567_v9 }
 0x28b   : > { %v590_v13 = vpop.permute.xlu1 %589  ;;  %v588_v14 = vpop.permute.xlu0 %587  ;;  %1404 = vmatpush3.bf16.msra.mxu1 %v1847_v16 }
 0x28c   : > { %v602_v15 = vsel %vm344_vm4, %v598_v11, %v590_v13  ;;  %v601_v17 = vsel %vm344_vm4, %v597_v12, %v588_v14  ;;  %1399 = vmatprep.subr.bf16.mxu1 %v1884_v35  ;;  %v1168_v12 = vld [vmem:[%s2199_s3 + $0x30] sm:$0xff]  ;;  %v1166_v14 = vld [vmem:[%s2199_s3 + $0x20] sm:$0xff] }
 0x28d   : > { %1292 = vmatprep.mubr.msk.f32.mxu1 %vm349_vm5, %v601_v17  ;;  %v1169_v17 = vld [vmem:[%s2199_s3 + $0x38] sm:$0xff] }
 0x28e   : > { %1293 = vmatmul.mubr.msk.f32.gmra.mrb[2].mxu1 %vm349_vm5, %v602_v15  ;;  %v1167_v15 = vld [vmem:[%s2199_s3 + $0x28] sm:$0xff] }
 0x28f   : > { %1405 = vmatpush3.bf16.msra.mxu1 %v1884_v35 }
 0x290   : > { %1400 = vmatprep.subr.bf16.mxu1 %v1888_v36 }
 0x293   : > { %1406 = vmatpush3.bf16.msra.mxu1 %v1888_v36 }
 0x294   : > { %1401 = vmatprep.subr.bf16.mxu1 %v1905_v43 }
 0x297   : > { %1407 = vmatpush3.bf16.msra.mxu1 %v1905_v43 }
 0x298   : > { %1402 = vmatprep.subr.bf16.mxu1 %v1921_v48 }
 0x29b   : > { %1408 = vmatpush3.bf16.msra.mxu1 %v1921_v48 }
 0x359   : > { %v1291_v16 = vpop.f32.mrb[0].mxu1 }
 0x35a   : > { %v709_v18 = vadd.f32 %v1291_v16, %v1165_v10  ;;  %v681_v19 = vpop.f32.mrb[1].mxu1 }
 0x35b   : > { %v708_v35 = vadd.f32 %v1165_v10, %v681_v19 }
 0x35c   : > { %v713_v20 = vmax.f32 %v709_v18, 0.0 }
 0x35d   : > { %v712_v21 = vmax.f32 %v708_v35, 0.0  ;;  %v777_v35 = vld [vmem:[#allocation5 + $0x30] sm:$0xff] }
 0x35e   : > { %v717_v36 = vsel %vm339_vm3, %v713_v20, 0.0 }
 0x35f   : > { %v716_v22 = vsel %vm339_vm3, %v712_v21, 0.0 }
 0x360   : > { %v718_v23 = vadd.f32 %v717_v36, %v716_v22  ;;  %v778_v36 = vld [vmem:[#allocation5 + $0x38] sm:$0xff] }
 0x361   : > { %v1294_v43 = vpop.f32.mrb[2].mxu1 }
 0x362   : > { %v711_v24 = vadd.f32 %v1294_v43, %v1165_v10  ;;  %v691_v25 = vpop.f32.mrb[3].mxu1 }
 0x363   : > { %v710_v26 = vadd.f32 %v1165_v10, %v691_v25 }
 0x364   : > { %v715_v48 = vmax.f32 %v711_v24, 0.0 }
 0x365   : > { %v714_v27 = vmax.f32 %v710_v26, 0.0 }
 0x366   : > { %v721_v34 = vsel %vm339_vm3, %v715_v48, 0.0 }
 0x367   : > { %v719_v28 = vsel %vm339_vm3, %v714_v27, 0.0 }
 0x368   : > { %v720_v33 = vadd.f32 %v719_v28, %v718_v23 }
 0x36a   : > { %v722_v37 = vadd.f32 %v721_v34, %v720_v33 }
 0x36c   : > { %v723_v38 = vrot.slane %v722_v37, 4 }
 0x36e   : > { %v724_v2 = vadd.f32 %v723_v38, %v722_v37 }
 0x370   : > { %v725_v39 = vrot.slane %v724_v2, 2 }
 0x372   : > { %v726_v0 = vadd.f32 %v725_v39, %v724_v2 }
 0x374   : > { %v727_v40 = vrot.slane %v726_v0, 1 }
 0x376   : > { %v728_v1 = vadd.f32 %v727_v40, %v726_v0 }
 0x378   : > { %v729_v41 = vmul.f32 0.03125, %v728_v1 }
 0x37a   : > { %v730_v42 = vsub.f32 %v712_v21, %v729_v41  ;;  %v731_v6 = vsub.f32 %v713_v20, %v729_v41  ;;  %v732_v44 = vsub.f32 %v714_v27, %v729_v41  ;;  %v733_v45 = vsub.f32 %v715_v48, %v729_v41  ;;  %v775_v20 = vld [vmem:[#allocation5 + $0x20] sm:$0xff]  ;;  %v776_v21 = vld [vmem:[#allocation5 + $0x28] sm:$0xff] }
 0x37c   : > { %v734_v46 = vmul.f32 %v730_v42, %v730_v42  ;;  %v735_v47 = vmul.f32 %v731_v6, %v731_v6  ;;  %v736_v49 = vmul.f32 %v732_v44, %v732_v44  ;;  %v737_v50 = vmul.f32 %v733_v45, %v733_v45 }
 0x37e   : > { %v738_v51 = vsel %vm339_vm3, %v734_v46, 0.0  ;;  %v739_v52 = vsel %vm339_vm3, %v735_v47, 0.0  ;;  %v741_v54 = vsel %vm339_vm3, %v736_v49, 0.0  ;;  %v743_v56 = vsel %vm339_vm3, %v737_v50, 0.0 }
 0x37f   : > { %v740_v53 = vadd.f32 %v739_v52, %v738_v51 }
 0x381   : > { %v742_v55 = vadd.f32 %v741_v54, %v740_v53 }
 0x383   : > { %v744_v57 = vadd.f32 %v743_v56, %v742_v55 }
 0x385   : > { %v745_v58 = vrot.slane %v744_v57, 4 }
 0x387   : > { %v746_v59 = vadd.f32 %v745_v58, %v744_v57 }
 0x389   : > { %v747_v60 = vrot.slane %v746_v59, 2 }
 0x38b   : > { %v748_v61 = vadd.f32 %v747_v60, %v746_v59 }
 0x38d   : > { %v749_v62 = vrot.slane %v748_v61, 1 }
 0x38f   : > { %v750_v63 = vadd.f32 %v749_v62, %v748_v61 }
 0x391   : > { %v751_v3 = vmul.f32 0.032258064, %v750_v63 }
 0x393   : > { %1476 = vrsqrt.f32 %v751_v3  ;;  %vm754_vm8 = vcmp.eq.f32.partialorder %v751_v3, inf  ;;  %v757_v7 = vand.u32 2147483648, %v751_v3  ;;  %vm756_vm9 = vcmp.eq.f32.partialorder %v751_v3, 0.0 }
 0x39d   : > { %v1477_v4 = vpop.eup %1476 }
 0x39e   : > { %v753_v5 = vmul.f32 %v1477_v4, %v751_v3 }
 0x3a0   : > { %v755_v8 = vsel %vm754_vm8, %v751_v3, %v753_v5 }
 0x3a1   : > { %v758_v9 = vsel %vm756_vm9, %v757_v7, %v755_v8 }
 0x3a2   : > { %v759_v11 = vadd.f32 1e-06, %v758_v9 }
 0x3a4   : > { %1478 = vrcp.f32 %v759_v11 }
 0x3ae   : > { %v1479_v13 = vpop.eup %1478 }
 0x3af   : > { %v766_v10 = vmul.f32 %v1479_v13, %v730_v42  ;;  %v767_v16 = vmul.f32 %v1479_v13, %v731_v6  ;;  %v768_v18 = vmul.f32 %v1479_v13, %v732_v44  ;;  %v769_v19 = vmul.f32 %v1479_v13, %v733_v45 }
 0x3b1   : > { %v772_v22 = vmul.f32 %v1168_v12, %v768_v18  ;;  %v770_v23 = vmul.f32 %v1166_v14, %v766_v10  ;;  %v771_v43 = vmul.f32 %v1167_v15, %v767_v16  ;;  %v773_v24 = vmul.f32 %v1169_v17, %v769_v19  ;;  %v1175_v17 = vld [vmem:[%s2198_s2 + $0x2] ss:$0 sm:$0xff] }
 0x3b3   : > { %v781_v25 = vadd.f32 %v777_v35, %v772_v22  ;;  %v779_v26 = vadd.f32 %v775_v20, %v770_v23  ;;  %v780_v48 = vadd.f32 %v776_v21, %v771_v43  ;;  %v782_v27 = vadd.f32 %v778_v36, %v773_v24 }
 0x3b5   : > { %v2069_v28 = vadd.f32 %v781_v25, %v1986_v29  ;;  %v2072_v33 = vadd.f32 %v779_v26, %v1989_v30  ;;  %v2075_v34 = vadd.f32 %v780_v48, %v1992_v31  ;;  %v2078_v37 = vadd.f32 %v782_v27, %v1995_v32 }
 0x3b7   : > { %v792_v38 = vrot.slane %v2072_v33, 6  ;;  %v793_v2 = vrot.slane %v2075_v34, 6  ;;  %v795_v39 = vrot.slane %v2069_v28, 6  ;;  %v797_v0 = vrot.slane %v2078_v37, 6 }
 0x3b9   : > { %v794_v29 = vsel %vm791_vm10, %v792_v38, %v793_v2  ;;  %v796_v30 = vsel %vm791_vm10, %v793_v2, %v795_v39  ;;  %v804_v40 = vsel %vm791_vm10, 0.0, %v792_v38  ;;  %v798_v31 = vsel %vm791_vm10, %v795_v39, %v797_v0 }
 0x3ba   : > { %v809_v1 = vrot.slane %v794_v29, 2  ;;  %v811_v32 = vrot.slane %v796_v30, 2  ;;  %v808_v41 = vrot.slane %v804_v40, 2  ;;  %v813_v42 = vrot.slane %v798_v31, 2 }
 0x3bb   : > { %v830_v45 = vrot.slane %v804_v40, 4  ;;  %v831_v46 = vrot.slane %v794_v29, 4  ;;  %v805_v47 = vsel %vm791_vm10, %v797_v0, 0.0  ;;  %v833_v52 = vrot.slane %v796_v30, 4 }
 0x3bc   : > { %v812_v6 = vsel %vm317_vm1, %v809_v1, %v811_v32  ;;  %v810_v44 = vsel %vm317_vm1, %v808_v41, %v809_v1  ;;  %v814_v49 = vsel %vm317_vm1, %v811_v32, %v813_v42  ;;  %v815_v51 = vrot.slane %v805_v47, 2 }
 0x3bd   : > { %819 = vrot.lane.b32.xlu1 %v812_v6, %s1619_s7  ;;  %817 = vrot.lane.b32.xlu0 %v810_v44, %s1619_s7  ;;  %v832_v50 = vsel %vm829_vm11, %v830_v45, %v831_v46  ;;  %v834_v54 = vsel %vm829_vm11, %v831_v46, %v833_v52  ;;  %v835_v55 = vrot.slane %v798_v31, 4  ;;  %v837_v56 = vrot.slane %v805_v47, 4 }
 0x3be   : > { %v816_v53 = vsel %vm317_vm1, %v813_v42, %v815_v51 }
 0x3bf   : > { %v838_v57 = vsel %vm829_vm11, %v835_v55, %v837_v56  ;;  %v836_v58 = vsel %vm829_vm11, %v833_v52, %v835_v55 }
 0x3c1   : > { %821 = vrot.lane.b32.xlu1 %v814_v49, %s1619_s7  ;;  %839 = vrot.lane.b32.xlu0 %v832_v50, %s1618_s12 }
 0x3c5   : > { %823 = vrot.lane.b32.xlu1 %v816_v53, %s1619_s7  ;;  %841 = vrot.lane.b32.xlu0 %v834_v54, %s1618_s12  ;;  %s2142_s7 = scalar_lea.hbm %s2201_s5, %s1186_s14 }
 0x3c9   : > { %845 = vrot.lane.b32.xlu1 %v838_v57, %s1618_s12  ;;  %843 = vrot.lane.b32.xlu0 %v836_v58, %s1618_s12 }
 0x42f   : > { %v820_v59 = vpop.permute.xlu1 %819  ;;  %v818_v60 = vpop.permute.xlu0 %817 }
 0x430   : > { %v851_v61 = vsel %vm339_vm3, %v804_v40, %v818_v60  ;;  %v852_v4 = vsel %vm339_vm3, %v794_v29, %v820_v59 }
 0x433   : > { %v822_v62 = vpop.permute.xlu1 %821  ;;  %v840_v63 = vpop.permute.xlu0 %839 }
 0x434   : > { %v855_v3 = vsel %vm344_vm4, %v851_v61, %v840_v63  ;;  %v853_v9 = vsel %vm339_vm3, %v796_v30, %v822_v62 }
 0x435   : > { %1319 = vmatprep.mubr.msk.f32.mxu0 %vm349_vm5, %v855_v3 }
 0x437   : > { %v824_v5 = vpop.permute.xlu1 %823  ;;  %v842_v7 = vpop.permute.xlu0 %841 }
 0x438   : > { %v856_v8 = vsel %vm344_vm4, %v852_v4, %v842_v7  ;;  %v854_v11 = vsel %vm339_vm3, %v798_v31, %v824_v5 }
 0x439   : > { %1320 = vmatmul.mubr.msk.f32.vlgmr.msra.gmra.mrb[4].mxu0 %vm349_vm5, %v856_v8 }
 0x43b   : > { %v846_v12 = vpop.permute.xlu1 %845  ;;  %v844_v13 = vpop.permute.xlu0 %843 }
 0x43c   : > { %v858_v14 = vsel %vm344_vm4, %v854_v11, %v846_v12  ;;  %v857_v15 = vsel %vm344_vm4, %v853_v9, %v844_v13  ;;  %v1176_v11 = vld [vmem:[%s2199_s3 + $0x40] sm:$0xff]  ;;  %v1177_v13 = vld [vmem:[%s2199_s3 + $0x48] sm:$0xff] }
 0x43d   : > { %1322 = vmatprep.mubr.msk.f32.mxu1 %vm349_vm5, %v857_v15  ;;  %v1179_v15 = vld [vmem:[%s2199_s3 + $0x58] sm:$0xff] }
 0x43e   : > { %1323 = vmatmul.mubr.msk.f32.vlgmr.msra.gmra.mrb[4].mxu1 %vm349_vm5, %v858_v14  ;;  %v1178_v14 = vld [vmem:[%s2199_s3 + $0x50] sm:$0xff] }
 0x50c   : > { %v1321_v10 = vpop.f32.mrb[4].mxu0 }
 0x50d   : > { %v965_v16 = vadd.f32 %v1321_v10, %v1175_v17  ;;  %v937_v18 = vpop.f32.mrb[5].mxu0 }
 0x50e   : > { %v964_v19 = vadd.f32 %v1175_v17, %v937_v18 }
 0x50f   : > { %v969_v35 = vmax.f32 %v965_v16, 0.0 }
 0x510   : > { %v968_v20 = vmax.f32 %v964_v19, 0.0  ;;  %v1031_v19 = vld [vmem:[#allocation5 + $0x40] sm:$0xff] }
 0x511   : > { %v973_v21 = vsel %vm339_vm3, %v969_v35, 0.0  ;;  %v1324_v36 = vpop.f32.mrb[4].mxu1 }
 0x512   : > { %v972_v22 = vsel %vm339_vm3, %v968_v20, 0.0  ;;  %v967_v23 = vadd.f32 %v1324_v36, %v1175_v17  ;;  %v947_v43 = vpop.f32.mrb[5].mxu1 }
 0x513   : > { %v974_v24 = vadd.f32 %v973_v21, %v972_v22  ;;  %v966_v25 = vadd.f32 %v1175_v17, %v947_v43  ;;  %v1034_v21 = vld [vmem:[#allocation5 + $0x58] sm:$0xff] }
 0x514   : > { %v971_v26 = vmax.f32 %v967_v23, 0.0 }
 0x515   : > { %v970_v48 = vmax.f32 %v966_v25, 0.0 }
 0x516   : > { %v977_v2 = vsel %vm339_vm3, %v971_v26, 0.0 }
 0x517   : > { %v975_v27 = vsel %vm339_vm3, %v970_v48, 0.0 }
 0x518   : > { %v976_v38 = vadd.f32 %v975_v27, %v974_v24 }
 0x51a   : > { %v978_v39 = vadd.f32 %v977_v2, %v976_v38 }
 0x51c   : > { %v979_v0 = vrot.slane %v978_v39, 4 }
 0x51e   : > { %v980_v29 = vadd.f32 %v979_v0, %v978_v39 }
 0x520   : > { %v981_v30 = vrot.slane %v980_v29, 2 }
 0x522   : > { %v982_v40 = vadd.f32 %v981_v30, %v980_v29 }
 0x524   : > { %v983_v31 = vrot.slane %v982_v40, 1 }
 0x526   : > { %v984_v1 = vadd.f32 %v983_v31, %v982_v40 }
 0x528   : > { %v985_v32 = vmul.f32 0.03125, %v984_v1 }
 0x52a   : > { %v986_v41 = vsub.f32 %v968_v20, %v985_v32  ;;  %v987_v42 = vsub.f32 %v969_v35, %v985_v32  ;;  %v988_v6 = vsub.f32 %v970_v48, %v985_v32  ;;  %v989_v44 = vsub.f32 %v971_v26, %v985_v32  ;;  %v1032_v35 = vld [vmem:[#allocation5 + $0x48] sm:$0xff]  ;;  %v1033_v20 = vld [vmem:[#allocation5 + $0x50] sm:$0xff] }
 0x52c   : > { %v990_v45 = vmul.f32 %v986_v41, %v986_v41  ;;  %v991_v46 = vmul.f32 %v987_v42, %v987_v42  ;;  %v992_v47 = vmul.f32 %v988_v6, %v988_v6  ;;  %v993_v49 = vmul.f32 %v989_v44, %v989_v44 }
 0x52e   : > { %v994_v50 = vsel %vm339_vm3, %v990_v45, 0.0  ;;  %v995_v51 = vsel %vm339_vm3, %v991_v46, 0.0  ;;  %v997_v53 = vsel %vm339_vm3, %v992_v47, 0.0  ;;  %v999_v55 = vsel %vm339_vm3, %v993_v49, 0.0 }
 0x52f   : > { %v996_v52 = vadd.f32 %v995_v51, %v994_v50 }
 0x531   : > { %v998_v54 = vadd.f32 %v997_v53, %v996_v52 }
 0x533   : > { %v1000_v56 = vadd.f32 %v999_v55, %v998_v54 }
 0x535   : > { %v1001_v57 = vrot.slane %v1000_v56, 4 }
 0x537   : > { %v1002_v58 = vadd.f32 %v1001_v57, %v1000_v56 }
 0x539   : > { %v1003_v59 = vrot.slane %v1002_v58, 2 }
 0x53b   : > { %v1004_v60 = vadd.f32 %v1003_v59, %v1002_v58 }
 0x53d   : > { %v1005_v61 = vrot.slane %v1004_v60, 1 }
 0x53f   : > { %v1006_v62 = vadd.f32 %v1005_v61, %v1004_v60 }
 0x541   : > { %v1007_v63 = vmul.f32 0.032258064, %v1006_v62 }
 0x543   : > { %1480 = vrsqrt.f32 %v1007_v63  ;;  %vm1010_vm12 = vcmp.eq.f32.partialorder %v1007_v63, inf  ;;  %v1013_v5 = vand.u32 2147483648, %v1007_v63  ;;  %vm1012_vm13 = vcmp.eq.f32.partialorder %v1007_v63, 0.0 }
 0x54d   : > { %v1481_v3 = vpop.eup %1480 }
 0x54e   : > { %v1009_v4 = vmul.f32 %v1481_v3, %v1007_v63 }
 0x550   : > { %v1011_v7 = vsel %vm1010_vm12, %v1007_v63, %v1009_v4 }
 0x551   : > { %v1014_v8 = vsel %vm1012_vm13, %v1013_v5, %v1011_v7 }
 0x552   : > { %v1015_v9 = vadd.f32 1e-06, %v1014_v8 }
 0x554   : > { %1482 = vrcp.f32 %v1015_v9 }
 0x55e   : > { %v1483_v12 = vpop.eup %1482 }
 0x55f   : > { %v1022_v17 = vmul.f32 %v1483_v12, %v986_v41  ;;  %v1023_v10 = vmul.f32 %v1483_v12, %v987_v42  ;;  %v1024_v16 = vmul.f32 %v1483_v12, %v988_v6  ;;  %v1025_v18 = vmul.f32 %v1483_v12, %v989_v44 }
 0x561   : > { %v1026_v36 = vmul.f32 %v1176_v11, %v1022_v17  ;;  %v1027_v22 = vmul.f32 %v1177_v13, %v1023_v10  ;;  %v1028_v23 = vmul.f32 %v1178_v14, %v1024_v16  ;;  %v1029_v43 = vmul.f32 %v1179_v15, %v1025_v18 }
 0x563   : > { %v1035_v24 = vadd.f32 %v1031_v19, %v1026_v36  ;;  %v1036_v25 = vadd.f32 %v1032_v35, %v1027_v22  ;;  %v1037_v26 = vadd.f32 %v1033_v20, %v1028_v23  ;;  %v1038_v48 = vadd.f32 %v1034_v21, %v1029_v43 }
 0x565   : > { %v1039_v27 = vadd.f32 %v1035_v24, %v2072_v33  ;;  %v1040_v38 = vadd.f32 %v1036_v25, %v2075_v34  ;;  %v1041_v2 = vadd.f32 %v1037_v26, %v2069_v28  ;;  %v1042_v39 = vadd.f32 %v1038_v48, %v2078_v37 }
 0x567   : > { %1045 = vst.msk [vmem:[%s257_s6 + $0x10] sm:$0xff] %vm339_vm3, %v1041_v2  ;;  %1043 = vst.msk [vmem:[%s257_s6] sm:$0xff] %vm339_vm3, %v1039_v27 }
 0x568   : > { %1044 = vst.msk [vmem:[%s257_s6 + $0x8] sm:$0xff] %vm339_vm3, %v1040_v38  ;;  %1046 = vst.msk [vmem:[%s257_s6 + $0x18] sm:$0xff] %vm339_vm3, %v1042_v39 }
 0x569   : > { %1555 = shalt.err (!%p1552_p7)
}
 0x56a   : > { %s1556_s10 = scalar_lea.hbm %s2142_s7, 512  ;;  %s1560_s16 = scalar_lea.hbm %s2201_s5, 1024 }
 0x56b   : > { %p1557_p9 = scmp.ne.s32.totalorder %s2142_s7, %s1556_s10  ;;  %p1561_p5 = scmp.lt.u32.totalorder %s2142_s7, %s2201_s5 }
 0x56c   : > { %p1562_p11 = scmp.lt.u32.totalorder %s1560_s16, %s1556_s10  ;;  %p1564_p4 = scmp.lt.u32.totalorder %s1556_s10, %s2142_s7 }
 0x56d   : > { %p1558_p1 = pnand %p1557_p9, %p1747_p12 }
 0x56e   : > { %p1563_p2 = por %p1562_p11, %p1561_p5 }
 0x56f   : > { %p1559_p0 = pneg %p1558_p1 }
 0x570   : > { %p1565_p6 = por %p1564_p4, %p1563_p2 }
 0x572   : > { %p1566_p8 = pnand %p1565_p6, %p1559_p0 }
 0x574   : > { %1569 = shalt.err (!%p1566_p8)
}
 0x575   : > { %s1621_s6 = smov 128   ;;  %s1622_s13 = smov 8  }
 0x576   : > { %1415 = dma.vmem_to_hbm [thread:$0]  (%p1747_p12), %s2144_s15, 512, %s2142_s7, %s1048_s22, %s1621_s6, %s1621_s6, %s1622_s13  }
 0x577 PF: > { %s1076_s12 = sand.u32 1, %s1600_s18   ;;  %p2216_p10 = scmp.ne.s32.totalorder %s2206_s25, 0 }
 0x578   : > { %p2217_p13 = scmp.ge.s32.totalorder %s1612_s21, 2  ;;  %s1077_s11 = scalar_lea.sflag [#allocation4], %s1076_s12 }
 0x57a   : > { %p1426_p3 = pnand %p2217_p13, %p2216_p10 }
 0x57c   : > { %1595 = dma.done.wait (!%p1426_p3), %s1077_s11, 512  }
 0x57d   : > { %1597 = vsyncadd (!%p1426_p3), %s1077_s11, 4294966784  ;;  %p19_p7 = scmp.ge.s32.totalorder %s1709_s30, 4   ;;  %s2218_s18 = smov %s1604_s19 }
 0x57e   : > { %s2219_s19 = smov %s1608_s20  ;;  %s2220_s20 = smov %s1743_s8 }
 0x57f   : > { %s2221_s21 = smov %s1709_s30  ;;  %21 = sbr.rel (!%p19_p7) target bundleno = 6 (0x6), region = 95 }
 0x586   :  { %1082 = vsyncpa [#allocation3], 1 }
 0x587   :  { %1084 = vsyncpa [#allocation3 + $0x1], 1 }
 0x588   :  { %1085 = vsyncpa [#allocation6], 1 }
 0x589   :  { %1086 = vsyncpa [#allocation4], 1 }
 0x58a   :  { %1088 = vsyncpa [#allocation4 + $0x1], 1 }

</bundles_post_ra>
